<compile_context>
chip_gen: v6e
topology: v6e:2x2x1
jax: 0.10.0
libtpu: 0.0.40
codegen_flags: <defaults>
</compile_context>

<pallas_src>
import functools

import jax
import jax.numpy as jnp
from jax.experimental import pallas as pl
from jax.experimental.pallas import tpu as pltpu


def _round128(x):
    return ((x + 127) // 128) * 128


# ----------------------------------------------------------------------------
# Fused kernel: attention -> fused input projection -> LSTM recurrence -> linear
# ----------------------------------------------------------------------------
def decoder_kernel(ids_ref, h0_ref, c0_ref, enc_ref, wh_ref, win_ref, vec_ref,
                   logits_ref, hn_ref, cn_ref,
                   *, A, V, Vp, o_w1, o_w2, o_whh, o_wout):
    B, S, H = enc_ref.shape
    TB = ids_ref.shape[0]
    T = TB // B
    G4 = 4 * H
    f32 = jnp.float32

    # ---- Bahdanau additive attention (computed once from h0, as in the module) ----
    enc = enc_ref[...]                                                    # (B, S, H)
    e_enc = jnp.dot(enc.reshape(B * S, H), wh_ref[:, o_w1:o_w1 + A],
                    preferred_element_type=f32).reshape(B, S, A)
    h_att = (jnp.dot(h0_ref[...], wh_ref[:, o_w2:o_w2 + A],
                     preferred_element_type=f32)
             + vec_ref[0:1, o_w1:o_w1 + A])                               # (B, A)
    e = jnp.tanh(e_enc + h_att[:, None, :])                               # (B, S, A)
    # score via VPU multiply + lane reduce (no 1-lane-output matmul); att_v bias cancels
    score = jnp.sum(e * vec_ref[0:1, o_w2:o_w2 + A], axis=-1)             # (B, S)
    score = score - jnp.max(score, axis=-1, keepdims=True)
    p = jnp.exp(score)
    attn = p / jnp.sum(p, axis=-1, keepdims=True)                         # (B, S)
    ctx = jnp.sum(attn[:, :, None] * enc, axis=1)                         # (B, H)

    # ---- input-side gate pre-activations: ONE matmul for [one-hot emb | ctx] ----
    ids = ids_ref[...]                                                    # (TB, 1)
    onehot = (jax.lax.broadcasted_iota(jnp.int32, (TB, V), 1) == ids).astype(f32)
    ctx_rep = jnp.broadcast_to(ctx[:, None, :], (B, T, H)).reshape(TB, H)
    lhs = jnp.concatenate([onehot, ctx_rep], axis=-1)                     # (TB, V+H)
    gates_in = (jnp.dot(lhs, win_ref[...], preferred_element_type=f32)
                + vec_ref[0:1, o_whh:o_whh + G4])                         # (TB, 4H)
    gates_in = gates_in.reshape(B, T, G4)

    # ---- LSTM recurrence: only h @ W_hh + gate math per step (gate order i,f,o,g) ----
    whh = wh_ref[:, o_whh:o_whh + G4]                                     # (H, 4H)
    h = h0_ref[...]
    c = c0_ref[...]
    hs = []
    for t in range(T):                         # T is tiny and static -> unrolled
        g_t = gates_in[:, t, :] + jnp.dot(h, whh, preferred_element_type=f32)
        sg = jax.nn.sigmoid(g_t[:, 0:3 * H])   # i | f | o in one EUP pass
        gg = jnp.tanh(g_t[:, 3 * H:4 * H])
        c = sg[:, H:2 * H] * c + sg[:, 0:H] * gg
        h = sg[:, 2 * H:3 * H] * jnp.tanh(c)
        hs.append(h)

    # ---- deferred output projection: batch-major rows (row = b*T + t), lane-dense ----
    hs_all = jnp.stack(hs, axis=1).reshape(TB, H)                         # (B*T, H)
    logits_ref[...] = (jnp.dot(hs_all, wh_ref[:, o_wout:o_wout + Vp],
                               preferred_element_type=f32)
                       + vec_ref[0:1, o_wout:o_wout + Vp])
    hn_ref[...] = h
    cn_ref[...] = c


# ----------------------------------------------------------------------------
# Param packing (one-time, outside jit)
# ----------------------------------------------------------------------------
def prepare_params(params):
    """Fold + pack params into 3 lane-dense buffers for the kernel."""
    emb = params["emb_table"]
    V, _E = emb.shape
    H = params["w_hh"].shape[0]
    A = params["att_w1"].shape[1]
    G4 = 4 * H
    Vout = params["w_out"].shape[1]
    Vp = _round128(Vout)

    def reorder(w):  # gate columns i,f,g,o -> i,f,o,g (enables fused sigmoid)
        return jnp.concatenate([w[:, :2 * H], w[:, 3 * H:4 * H], w[:, 2 * H:3 * H]],
                               axis=1)

    # Fold embedding lookup + ReLU + input projection into one table and stack it
    # with the context projection -> single input-side matmul in the kernel.
    emb_proj = jnp.dot(jax.nn.relu(emb), params["w_ih_emb"])              # (V, 4H)
    w_in = jnp.concatenate([reorder(emb_proj), reorder(params["w_ih_ctx"])], axis=0)

    # Packed, 128-lane-aligned weight buffer (rows = H): att_w1 | att_w2 | w_hh | w_out
    o_w1 = 0
    o_w2 = o_w1 + _round128(A)
    o_whh = o_w2 + _round128(A)
    o_wout = o_whh + _round128(G4)
    width = o_wout + Vp

    wh = jnp.zeros((H, width), jnp.float32)
    wh = wh.at[:, o_w1:o_w1 + A].set(params["att_w1"])
    wh = wh.at[:, o_w2:o_w2 + A].set(params["att_w2"])
    wh = wh.at[:, o_whh:o_whh + G4].set(reorder(params["w_hh"]))
    wh = wh.at[:, o_wout:o_wout + Vout].set(params["w_out"])

    # Packed bias / vector row: att_b | att_v | b_lstm | b_out (same column offsets)
    vec = jnp.zeros((1, width), jnp.float32)
    vec = vec.at[:, o_w1:o_w1 + A].set(params["att_b"])
    vec = vec.at[:, o_w2:o_w2 + A].set(params["att_v"].reshape(1, -1))
    vec = vec.at[:, o_whh:o_whh + G4].set(reorder(params["b_lstm"]))
    vec = vec.at[:, o_wout:o_wout + Vout].set(params["b_out"])

    return {"w_h": wh, "w_in": w_in, "vec": vec,
            "A": A, "V": V, "Vp": Vp,
            "o_w1": o_w1, "o_w2": o_w2, "o_whh": o_whh, "o_wout": o_wout}


# ----------------------------------------------------------------------------
# Wrapper
# ----------------------------------------------------------------------------
def _vmem():
    return pl.BlockSpec(memory_space=pltpu.MemorySpace.VMEM)


def decoder_forward(x, hidden, enc_out, prep):
    """Pallas implementation of Decoder.forward (single fused kernel)."""
    h0, c0 = hidden                                   # (1, B, H) each
    B, S, H = enc_out.shape
    T = x.shape[1]
    f32 = jnp.float32

    # batch-major flat ids (row = b*T + t): plain reshape, no transpose
    ids = x.reshape(B * T, 1).astype(jnp.int32)

    kernel = functools.partial(
        decoder_kernel, A=prep["A"], V=prep["V"], Vp=prep["Vp"],
        o_w1=prep["o_w1"], o_w2=prep["o_w2"],
        o_whh=prep["o_whh"], o_wout=prep["o_wout"])

    logits_p, h_n, c_n = pl.pallas_call(
        kernel,
        out_shape=(jax.ShapeDtypeStruct((B * T, prep["Vp"]), f32),
                   jax.ShapeDtypeStruct((B, H), f32),
                   jax.ShapeDtypeStruct((B, H), f32)),
        in_specs=[_vmem()] * 7,
        out_specs=(_vmem(), _vmem(), _vmem()),
    )(ids, h0[0], c0[0], enc_out, prep["w_h"], prep["w_in"], prep["vec"])

    # free reshape (already batch-major) + slice away the vocab lane padding
    logits = logits_p.reshape(B, T, prep["Vp"])[:, :, :prep["V"]]
    return logits, (h_n[None], c_n[None])


# ----------------------------------------------------------------------------
# Pure-JAX reference (correctness check only; natural param layout, gate order ifgo)
# ----------------------------------------------------------------------------
def decoder_reference(x, hidden, enc_out, params):
    h0, c0 = hidden
    h0 = h0[0]
    c0 = c0[0]
    e = jnp.tanh(jnp.einsum("bsh,ha->bsa", enc_out, params["att_w1"])
                 + (h0 @ params["att_w2"])[:, None, :]
                 + params["att_b"])
    score = jnp.squeeze(jnp.einsum("bsa,ao->bso", e, params["att_v"]), -1)
    attn = jax.nn.softmax(score, axis=1)
    ctx = jnp.sum(attn[..., None] * enc_out, axis=1)

    emb = jax.nn.relu(jnp.take(params["emb_table"], x, axis=0))
    H = h0.shape[1]
    T = x.shape[1]
    ctx_proj = ctx @ params["w_ih_ctx"]
    h, c = h0, c0
    outs = []
    for t in range(T):
        gates = (ctx_proj + emb[:, t, :] @ params["w_ih_emb"]
                 + h @ params["w_hh"] + params["b_lstm"])
        i = jax.nn.sigmoid(gates[:, 0 * H:1 * H])
        f = jax.nn.sigmoid(gates[:, 1 * H:2 * H])
        g = jnp.tanh(gates[:, 2 * H:3 * H])
        o = jax.nn.sigmoid(gates[:, 3 * H:4 * H])
        c = f * c + i * g
        h = o * jnp.tanh(c)
        outs.append(h @ params["w_out"] + params["b_out"])
    logits = jnp.stack(outs, axis=1)
    return logits, (h[None], c[None])


# ----------------------------------------------------------------------------
# Main
# ----------------------------------------------------------------------------
if __name__ == "__main__":
    # Small shapes consistent with the module.
    index_dim = 16          # vocab
    embedding_dim = 32
    hidden_dim = 32
    attention_dim = 16
    enc_directions = 2
    H = hidden_dim * enc_directions      # 64  (decoder LSTM hidden size)
    B, T, S = 2, 4, 8

    key = jax.random.PRNGKey(0)
    ks = jax.random.split(key, 16)

    def w(k, shape, scale=0.1):
        return (scale * jax.random.normal(k, shape)).astype(jnp.float32)

    params = {
        # embedding
        "emb_table": w(ks[0], (index_dim, embedding_dim)),
        # attention (Bahdanau); scalar v-bias omitted: it cancels in the softmax
        "att_w1": w(ks[1], (H, attention_dim)),
        "att_w2": w(ks[2], (H, attention_dim)),
        "att_b":  w(ks[3], (1, attention_dim)),
        "att_v":  w(ks[4], (attention_dim, 1)),
        # LSTM: weight_ih split into context / embedding halves, stored transposed
        # (input-features, 4H) so the kernel does x @ W.  Gate order: i, f, g, o.
        "w_ih_ctx": w(ks[6], (H, 4 * H)),
        "w_ih_emb": w(ks[7], (embedding_dim, 4 * H)),
        "w_hh":     w(ks[8], (H, 4 * H)),
        "b_lstm":   w(ks[9], (1, 4 * H)),          # b_ih + b_hh combined
        # output linear
        "w_out": w(ks[10], (H, index_dim)),
        "b_out": w(ks[11], (1, index_dim)),
    }

    x = jax.random.randint(ks[12], (B, T), 0, index_dim, dtype=jnp.int32)
    h0 = w(ks[13], (1, B, H), scale=0.5)
    c0 = w(ks[14], (1, B, H), scale=0.5)
    enc_out = w(ks[15], (B, S, H), scale=0.5)

    prep = prepare_params(params)      # one-time packing / fusion of the parameters
    fwd = jax.jit(functools.partial(decoder_forward, prep=prep))
    logits, (h_n, c_n) = fwd(x, (h0, c0), enc_out)
    jax.block_until_ready((logits, h_n, c_n))

    # correctness check against pure-JAX reference (natural param layout)
    ref_logits, (ref_h, ref_c) = decoder_reference(x, (h0, c0), enc_out, params)
    assert jnp.allclose(logits, ref_logits, atol=2e-4), "logits mismatch"
    assert jnp.allclose(h_n, ref_h, atol=2e-4), "h_n mismatch"
    assert jnp.allclose(c_n, ref_c, atol=2e-4), "c_n mismatch"

    print("KERNEL_OK")
</pallas_src>

<mosaic_0001>
module attributes {stable_mosaic.version = 11 : i64} {
  func.func @decoder_kernel(%arg0: memref<8x1xi32, #tpu.memory_space<vmem>>, %arg1: memref<2x64xf32, #tpu.memory_space<vmem>>, %arg2: memref<2x64xf32, #tpu.memory_space<vmem>>, %arg3: memref<2x8x64xf32, #tpu.memory_space<vmem>>, %arg4: memref<64x640xf32, #tpu.memory_space<vmem>>, %arg5: memref<80x256xf32, #tpu.memory_space<vmem>>, %arg6: memref<1x640xf32, #tpu.memory_space<vmem>>, %arg7: memref<8x128xf32, #tpu.memory_space<vmem>>, %arg8: memref<2x64xf32, #tpu.memory_space<vmem>>, %arg9: memref<2x64xf32, #tpu.memory_space<vmem>>) attributes {dimension_semantics = [], scalar_prefetch = 0 : i64, scratch_operands = 0 : i64, tpu.core_type = #tpu.core_type<tc>} {
    %c0 = arith.constant 0 : index
    %c0_0 = arith.constant 0 : index
    %c0_1 = arith.constant 0 : index
    %0 = vector.load %arg3[%c0, %c0_0, %c0_1] : memref<2x8x64xf32, #tpu.memory_space<vmem>>, vector<2x8x64xf32>
    %1 = vector.shape_cast %0 : vector<2x8x64xf32> to vector<16x64xf32>
    %c0_2 = arith.constant 0 : index
    %c0_3 = arith.constant 0 : index
    %2 = vector.load %arg4[%c0_2, %c0_3] : memref<64x640xf32, #tpu.memory_space<vmem>>, vector<64x16xf32>
    %cst = arith.constant dense<0.000000e+00> : vector<16x16xf32>
    %3 = tpu.matmul %1, %2, %cst {dimension_numbers = #tpu.dot_dimension_numbers<[1], [0], [0], [1], [0, 0, 1, 1], [], []>} : vector<16x64xf32>, vector<64x16xf32>, vector<16x16xf32> -> vector<16x16xf32>
    %4 = vector.shape_cast %3 : vector<16x16xf32> to vector<2x8x16xf32>
    %c0_4 = arith.constant 0 : index
    %c0_5 = arith.constant 0 : index
    %5 = vector.load %arg1[%c0_4, %c0_5] : memref<2x64xf32, #tpu.memory_space<vmem>>, vector<2x64xf32>
    %c0_6 = arith.constant 0 : index
    %c128 = arith.constant 128 : index
    %6 = vector.load %arg4[%c0_6, %c128] : memref<64x640xf32, #tpu.memory_space<vmem>>, vector<64x16xf32>
    %cst_7 = arith.constant dense<0.000000e+00> : vector<2x16xf32>
    %7 = tpu.matmul %5, %6, %cst_7 {dimension_numbers = #tpu.dot_dimension_numbers<[1], [0], [0], [1], [0, 0, 1, 1], [], []>} : vector<2x64xf32>, vector<64x16xf32>, vector<2x16xf32> -> vector<2x16xf32>
    %c0_8 = arith.constant 0 : index
    %c0_9 = arith.constant 0 : index
    %8 = vector.load %arg6[%c0_8, %c0_9] : memref<1x640xf32, #tpu.memory_space<vmem>>, vector<1x16xf32>
    %9 = vector.broadcast %8 : vector<1x16xf32> to vector<2x16xf32>
    %10 = arith.addf %7, %9 : vector<2x16xf32>
    %11 = vector.shape_cast %10 : vector<2x16xf32> to vector<2x1x16xf32>
    %12 = vector.broadcast %11 : vector<2x1x16xf32> to vector<2x8x16xf32>
    %13 = arith.addf %4, %12 : vector<2x8x16xf32>
    %14 = math.tanh %13 : vector<2x8x16xf32>
    %c0_10 = arith.constant 0 : index
    %c128_11 = arith.constant 128 : index
    %15 = vector.load %arg6[%c0_10, %c128_11] : memref<1x640xf32, #tpu.memory_space<vmem>>, vector<1x16xf32>
    %16 = vector.shape_cast %15 : vector<1x16xf32> to vector<1x1x16xf32>
    %17 = vector.broadcast %16 : vector<1x1x16xf32> to vector<2x8x16xf32>
    %18 = arith.mulf %14, %17 : vector<2x8x16xf32>
    %cst_12 = arith.constant dense<0.000000e+00> : vector<2x8xf32>
    %19 = vector.multi_reduction <add>, %18, %cst_12 [2] : vector<2x8x16xf32> to vector<2x8xf32>
    %cst_13 = arith.constant dense<0xFF800000> : vector<2xf32>
    %20 = vector.multi_reduction <maximumf>, %19, %cst_13 [1] : vector<2x8xf32> to vector<2xf32>
    %21 = vector.shape_cast %20 : vector<2xf32> to vector<2x1xf32>
    %22 = vector.broadcast %21 : vector<2x1xf32> to vector<2x8xf32>
    %23 = arith.subf %19, %22 : vector<2x8xf32>
    %24 = math.exp %23 : vector<2x8xf32>
    %cst_14 = arith.constant dense<0.000000e+00> : vector<2xf32>
    %25 = vector.multi_reduction <add>, %24, %cst_14 [1] : vector<2x8xf32> to vector<2xf32>
    %26 = vector.shape_cast %25 : vector<2xf32> to vector<2x1xf32>
    %27 = vector.broadcast %26 : vector<2x1xf32> to vector<2x8xf32>
    %28 = arith.divf %24, %27 : vector<2x8xf32>
    %29 = vector.shape_cast %28 : vector<2x8xf32> to vector<2x8x1xf32>
    %30 = vector.broadcast %29 : vector<2x8x1xf32> to vector<2x8x64xf32>
    %31 = arith.mulf %30, %0 : vector<2x8x64xf32>
    %cst_15 = arith.constant dense<0.000000e+00> : vector<2x64xf32>
    %32 = vector.multi_reduction <add>, %31, %cst_15 [1] : vector<2x8x64xf32> to vector<2x64xf32>
    %c0_16 = arith.constant 0 : index
    %c0_17 = arith.constant 0 : index
    %33 = vector.load %arg0[%c0_16, %c0_17] : memref<8x1xi32, #tpu.memory_space<vmem>>, vector<8x1xi32>
    %34 = tpu.iota {dimensions = array<i32: 1>} : vector<8x16xi32>
    %35 = vector.broadcast %33 : vector<8x1xi32> to vector<8x16xi32>
    %36 = arith.cmpi eq, %34, %35 : vector<8x16xi32>
    %37 = arith.extui %36 : vector<8x16xi1> to vector<8x16xi32>
    %38 = arith.sitofp %37 : vector<8x16xi32> to vector<8x16xf32>
    %39 = vector.shape_cast %32 : vector<2x64xf32> to vector<2x1x64xf32>
    %40 = vector.shape_cast %39 : vector<2x1x64xf32> to vector<2x1x64xf32>
    %41 = vector.broadcast %40 : vector<2x1x64xf32> to vector<2x4x64xf32>
    %42 = vector.shape_cast %41 : vector<2x4x64xf32> to vector<8x64xf32>
    %43 = tpu.concatenate %38, %42 in 1 : vector<8x16xf32>, vector<8x64xf32> -> vector<8x80xf32>
    %c0_18 = arith.constant 0 : index
    %c0_19 = arith.constant 0 : index
    %44 = vector.load %arg5[%c0_18, %c0_19] : memref<80x256xf32, #tpu.memory_space<vmem>>, vector<80x256xf32>
    %cst_20 = arith.constant dense<0.000000e+00> : vector<8x256xf32>
    %45 = tpu.matmul %43, %44, %cst_20 {dimension_numbers = #tpu.dot_dimension_numbers<[1], [0], [0], [1], [0, 0, 1, 1], [], []>} : vector<8x80xf32>, vector<80x256xf32>, vector<8x256xf32> -> vector<8x256xf32>
    %c0_21 = arith.constant 0 : index
    %c256 = arith.constant 256 : index
    %46 = vector.load %arg6[%c0_21, %c256] : memref<1x640xf32, #tpu.memory_space<vmem>>, vector<1x256xf32>
    %47 = vector.broadcast %46 : vector<1x256xf32> to vector<8x256xf32>
    %48 = arith.addf %45, %47 : vector<8x256xf32>
    %49 = vector.shape_cast %48 : vector<8x256xf32> to vector<2x4x256xf32>
    %c0_22 = arith.constant 0 : index
    %c256_23 = arith.constant 256 : index
    %50 = vector.load %arg4[%c0_22, %c256_23] : memref<64x640xf32, #tpu.memory_space<vmem>>, vector<64x256xf32>
    %c0_24 = arith.constant 0 : index
    %c0_25 = arith.constant 0 : index
    %51 = vector.load %arg1[%c0_24, %c0_25] : memref<2x64xf32, #tpu.memory_space<vmem>>, vector<2x64xf32>
    %c0_26 = arith.constant 0 : index
    %c0_27 = arith.constant 0 : index
    %52 = vector.load %arg2[%c0_26, %c0_27] : memref<2x64xf32, #tpu.memory_space<vmem>>, vector<2x64xf32>
    %53 = vector.extract_strided_slice %49 {offsets = [0, 0, 0], sizes = [2, 1, 256], strides = [1, 1, 1]} : vector<2x4x256xf32> to vector<2x1x256xf32>
    %54 = vector.shape_cast %53 : vector<2x1x256xf32> to vector<2x256xf32>
    %cst_28 = arith.constant dense<0.000000e+00> : vector<2x256xf32>
    %55 = tpu.matmul %51, %50, %cst_28 {dimension_numbers = #tpu.dot_dimension_numbers<[1], [0], [0], [1], [0, 0, 1, 1], [], []>} : vector<2x64xf32>, vector<64x256xf32>, vector<2x256xf32> -> vector<2x256xf32>
    %56 = arith.addf %54, %55 : vector<2x256xf32>
    %57 = vector.extract_strided_slice %56 {offsets = [0, 0], sizes = [2, 192], strides = [1, 1]} : vector<2x256xf32> to vector<2x192xf32>
    %58 = arith.negf %57 : vector<2x192xf32>
    %59 = math.exp %58 : vector<2x192xf32>
    %cst_29 = arith.constant 1.000000e+00 : f32
    %60 = vector.broadcast %cst_29 : f32 to vector<2x192xf32>
    %61 = arith.addf %60, %59 : vector<2x192xf32>
    %62 = arith.divf %60, %61 : vector<2x192xf32>
    %63 = vector.extract_strided_slice %56 {offsets = [0, 192], sizes = [2, 64], strides = [1, 1]} : vector<2x256xf32> to vector<2x64xf32>
    %64 = math.tanh %63 : vector<2x64xf32>
    %65 = vector.extract_strided_slice %62 {offsets = [0, 64], sizes = [2, 64], strides = [1, 1]} : vector<2x192xf32> to vector<2x64xf32>
    %66 = arith.mulf %65, %52 : vector<2x64xf32>
    %67 = vector.extract_strided_slice %62 {offsets = [0, 0], sizes = [2, 64], strides = [1, 1]} : vector<2x192xf32> to vector<2x64xf32>
    %68 = arith.mulf %67, %64 : vector<2x64xf32>
    %69 = arith.addf %66, %68 : vector<2x64xf32>
    %70 = vector.extract_strided_slice %62 {offsets = [0, 128], sizes = [2, 64], strides = [1, 1]} : vector<2x192xf32> to vector<2x64xf32>
    %71 = math.tanh %69 : vector<2x64xf32>
    %72 = arith.mulf %70, %71 : vector<2x64xf32>
    %73 = vector.extract_strided_slice %49 {offsets = [0, 1, 0], sizes = [2, 1, 256], strides = [1, 1, 1]} : vector<2x4x256xf32> to vector<2x1x256xf32>
    %74 = vector.shape_cast %73 : vector<2x1x256xf32> to vector<2x256xf32>
    %cst_30 = arith.constant dense<0.000000e+00> : vector<2x256xf32>
    %75 = tpu.matmul %72, %50, %cst_30 {dimension_numbers = #tpu.dot_dimension_numbers<[1], [0], [0], [1], [0, 0, 1, 1], [], []>} : vector<2x64xf32>, vector<64x256xf32>, vector<2x256xf32> -> vector<2x256xf32>
    %76 = arith.addf %74, %75 : vector<2x256xf32>
    %77 = vector.extract_strided_slice %76 {offsets = [0, 0], sizes = [2, 192], strides = [1, 1]} : vector<2x256xf32> to vector<2x192xf32>
    %78 = arith.negf %77 : vector<2x192xf32>
    %79 = math.exp %78 : vector<2x192xf32>
    %cst_31 = arith.constant 1.000000e+00 : f32
    %80 = vector.broadcast %cst_31 : f32 to vector<2x192xf32>
    %81 = arith.addf %80, %79 : vector<2x192xf32>
    %82 = arith.divf %80, %81 : vector<2x192xf32>
    %83 = vector.extract_strided_slice %76 {offsets = [0, 192], sizes = [2, 64], strides = [1, 1]} : vector<2x256xf32> to vector<2x64xf32>
    %84 = math.tanh %83 : vector<2x64xf32>
    %85 = vector.extract_strided_slice %82 {offsets = [0, 64], sizes = [2, 64], strides = [1, 1]} : vector<2x192xf32> to vector<2x64xf32>
    %86 = arith.mulf %85, %69 : vector<2x64xf32>
    %87 = vector.extract_strided_slice %82 {offsets = [0, 0], sizes = [2, 64], strides = [1, 1]} : vector<2x192xf32> to vector<2x64xf32>
    %88 = arith.mulf %87, %84 : vector<2x64xf32>
    %89 = arith.addf %86, %88 : vector<2x64xf32>
    %90 = vector.extract_strided_slice %82 {offsets = [0, 128], sizes = [2, 64], strides = [1, 1]} : vector<2x192xf32> to vector<2x64xf32>
    %91 = math.tanh %89 : vector<2x64xf32>
    %92 = arith.mulf %90, %91 : vector<2x64xf32>
    %93 = vector.extract_strided_slice %49 {offsets = [0, 2, 0], sizes = [2, 1, 256], strides = [1, 1, 1]} : vector<2x4x256xf32> to vector<2x1x256xf32>
    %94 = vector.shape_cast %93 : vector<2x1x256xf32> to vector<2x256xf32>
    %cst_32 = arith.constant dense<0.000000e+00> : vector<2x256xf32>
    %95 = tpu.matmul %92, %50, %cst_32 {dimension_numbers = #tpu.dot_dimension_numbers<[1], [0], [0], [1], [0, 0, 1, 1], [], []>} : vector<2x64xf32>, vector<64x256xf32>, vector<2x256xf32> -> vector<2x256xf32>
    %96 = arith.addf %94, %95 : vector<2x256xf32>
    %97 = vector.extract_strided_slice %96 {offsets = [0, 0], sizes = [2, 192], strides = [1, 1]} : vector<2x256xf32> to vector<2x192xf32>
    %98 = arith.negf %97 : vector<2x192xf32>
    %99 = math.exp %98 : vector<2x192xf32>
    %cst_33 = arith.constant 1.000000e+00 : f32
    %100 = vector.broadcast %cst_33 : f32 to vector<2x192xf32>
    %101 = arith.addf %100, %99 : vector<2x192xf32>
    %102 = arith.divf %100, %101 : vector<2x192xf32>
    %103 = vector.extract_strided_slice %96 {offsets = [0, 192], sizes = [2, 64], strides = [1, 1]} : vector<2x256xf32> to vector<2x64xf32>
    %104 = math.tanh %103 : vector<2x64xf32>
    %105 = vector.extract_strided_slice %102 {offsets = [0, 64], sizes = [2, 64], strides = [1, 1]} : vector<2x192xf32> to vector<2x64xf32>
    %106 = arith.mulf %105, %89 : vector<2x64xf32>
    %107 = vector.extract_strided_slice %102 {offsets = [0, 0], sizes = [2, 64], strides = [1, 1]} : vector<2x192xf32> to vector<2x64xf32>
    %108 = arith.mulf %107, %104 : vector<2x64xf32>
    %109 = arith.addf %106, %108 : vector<2x64xf32>
    %110 = vector.extract_strided_slice %102 {offsets = [0, 128], sizes = [2, 64], strides = [1, 1]} : vector<2x192xf32> to vector<2x64xf32>
    %111 = math.tanh %109 : vector<2x64xf32>
    %112 = arith.mulf %110, %111 : vector<2x64xf32>
    %113 = vector.extract_strided_slice %49 {offsets = [0, 3, 0], sizes = [2, 1, 256], strides = [1, 1, 1]} : vector<2x4x256xf32> to vector<2x1x256xf32>
    %114 = vector.shape_cast %113 : vector<2x1x256xf32> to vector<2x256xf32>
    %cst_34 = arith.constant dense<0.000000e+00> : vector<2x256xf32>
    %115 = tpu.matmul %112, %50, %cst_34 {dimension_numbers = #tpu.dot_dimension_numbers<[1], [0], [0], [1], [0, 0, 1, 1], [], []>} : vector<2x64xf32>, vector<64x256xf32>, vector<2x256xf32> -> vector<2x256xf32>
    %116 = arith.addf %114, %115 : vector<2x256xf32>
    %117 = vector.extract_strided_slice %116 {offsets = [0, 0], sizes = [2, 192], strides = [1, 1]} : vector<2x256xf32> to vector<2x192xf32>
    %118 = arith.negf %117 : vector<2x192xf32>
    %119 = math.exp %118 : vector<2x192xf32>
    %cst_35 = arith.constant 1.000000e+00 : f32
    %120 = vector.broadcast %cst_35 : f32 to vector<2x192xf32>
    %121 = arith.addf %120, %119 : vector<2x192xf32>
    %122 = arith.divf %120, %121 : vector<2x192xf32>
    %123 = vector.extract_strided_slice %116 {offsets = [0, 192], sizes = [2, 64], strides = [1, 1]} : vector<2x256xf32> to vector<2x64xf32>
    %124 = math.tanh %123 : vector<2x64xf32>
    %125 = vector.extract_strided_slice %122 {offsets = [0, 64], sizes = [2, 64], strides = [1, 1]} : vector<2x192xf32> to vector<2x64xf32>
    %126 = arith.mulf %125, %109 : vector<2x64xf32>
    %127 = vector.extract_strided_slice %122 {offsets = [0, 0], sizes = [2, 64], strides = [1, 1]} : vector<2x192xf32> to vector<2x64xf32>
    %128 = arith.mulf %127, %124 : vector<2x64xf32>
    %129 = arith.addf %126, %128 : vector<2x64xf32>
    %130 = vector.extract_strided_slice %122 {offsets = [0, 128], sizes = [2, 64], strides = [1, 1]} : vector<2x192xf32> to vector<2x64xf32>
    %131 = math.tanh %129 : vector<2x64xf32>
    %132 = arith.mulf %130, %131 : vector<2x64xf32>
    %133 = vector.shape_cast %72 : vector<2x64xf32> to vector<2x1x64xf32>
    %134 = vector.shape_cast %92 : vector<2x64xf32> to vector<2x1x64xf32>
    %135 = vector.shape_cast %112 : vector<2x64xf32> to vector<2x1x64xf32>
    %136 = vector.shape_cast %132 : vector<2x64xf32> to vector<2x1x64xf32>
    %137 = tpu.concatenate %133, %134, %135, %136 in 1 : vector<2x1x64xf32>, vector<2x1x64xf32>, vector<2x1x64xf32>, vector<2x1x64xf32> -> vector<2x4x64xf32>
    %138 = vector.shape_cast %137 : vector<2x4x64xf32> to vector<8x64xf32>
    %c0_36 = arith.constant 0 : index
    %c512 = arith.constant 512 : index
    %139 = vector.load %arg4[%c0_36, %c512] : memref<64x640xf32, #tpu.memory_space<vmem>>, vector<64x128xf32>
    %cst_37 = arith.constant dense<0.000000e+00> : vector<8x128xf32>
    %140 = tpu.matmul %138, %139, %cst_37 {dimension_numbers = #tpu.dot_dimension_numbers<[1], [0], [0], [1], [0, 0, 1, 1], [], []>} : vector<8x64xf32>, vector<64x128xf32>, vector<8x128xf32> -> vector<8x128xf32>
    %c0_38 = arith.constant 0 : index
    %c512_39 = arith.constant 512 : index
    %141 = vector.load %arg6[%c0_38, %c512_39] : memref<1x640xf32, #tpu.memory_space<vmem>>, vector<1x128xf32>
    %142 = vector.broadcast %141 : vector<1x128xf32> to vector<8x128xf32>
    %143 = arith.addf %140, %142 : vector<8x128xf32>
    %c0_40 = arith.constant 0 : index
    %c0_41 = arith.constant 0 : index
    %144 = vector.load %arg7[%c0_40, %c0_41] : memref<8x128xf32, #tpu.memory_space<vmem>>, vector<8x128xf32>
    tpu.vector_store %arg7[%c0_40, %c0_41], %143 {strides = array<i32>} : memref<8x128xf32, #tpu.memory_space<vmem>>, vector<8x128xf32>,
    %c0_42 = arith.constant 0 : index
    %c0_43 = arith.constant 0 : index
    %145 = vector.load %arg8[%c0_42, %c0_43] : memref<2x64xf32, #tpu.memory_space<vmem>>, vector<2x64xf32>
    tpu.vector_store %arg8[%c0_42, %c0_43], %132 {strides = array<i32>} : memref<2x64xf32, #tpu.memory_space<vmem>>, vector<2x64xf32>,
    %c0_44 = arith.constant 0 : index
    %c0_45 = arith.constant 0 : index
    %146 = vector.load %arg9[%c0_44, %c0_45] : memref<2x64xf32, #tpu.memory_space<vmem>>, vector<2x64xf32>
    tpu.vector_store %arg9[%c0_44, %c0_45], %129 {strides = array<i32>} : memref<2x64xf32, #tpu.memory_space<vmem>>, vector<2x64xf32>,
    return
  }
}

</mosaic_0001>

<bundles_post_ra>
// kernel: decoder_forward.1
= control target key start
LH: loop header
LB: loop body
LE: loop exit
PB: predicated region body
PF: predicated region fallthrough
CT: control target
= control target key end

     0   :  { %15 = vsyncpa [#allocation3], 0  ;;  %s2064_s0 = inlined_call_operand.vmem [shape: s32[8,1], index: 0, kind: input, shape index: {}]   ;;  %s2065_s1 = inlined_call_operand.hbm [shape: f32[2,64], index: 1, kind: input, shape index: {}]   ;;  %s2066_s2 = inlined_call_operand.hbm [shape: f32[2,64], index: 2, kind: input, shape index: {}]   ;;  %s2067_s3 = inlined_call_operand.vmem [shape: f32[2,8,64], index: 3, kind: input, shape index: {}]   ;;  %s2068_s4 = inlined_call_operand.hbm [shape: f32[64,640], index: 4, kind: input, shape index: {}]   ;;  %s2069_s5 = inlined_call_operand.hbm [shape: f32[80,256], index: 5, kind: input, shape index: {}]   ;;  %s2070_s6 = inlined_call_operand.vmem [shape: f32[1,640], index: 6, kind: input, shape index: {}]   ;;  %s2071_s7 = inlined_call_operand.hbm [shape: f32[8,128], index: 7, kind: output, shape index: {0}]   ;;  %s2072_s8 = inlined_call_operand.hbm [shape: f32[2,64], index: 8, kind: output, shape index: {1}]   ;;  %s2073_s9 = inlined_call_operand.hbm [shape: f32[2,64], index: 9, kind: output, shape index: {2}]  }
   0x1   :  { %16 = vsyncpa [#allocation6], 0 }
   0x2   :  { %17 = vsyncpa [#allocation9], 0 }
   0x3   :  { %18 = vsyncpa [#allocation4], 0 }
   0x4   :  { %19 = vsyncpa [#allocation12], 0  ;;  %s1689_s30 = smov [#allocation5]   ;;  %s1690_s11 = smov [#allocation2]  }
   0x5   :  { %s38_s10 = sshll.u32 %s1689_s30, 4  ;;  %s28_s12 = sshll.u32 %s1690_s11, 4  ;;  %s39_s10 = int_to_ptr.vmem [resolvable:$true] %s38_s10  ;;  %s29_s12 = int_to_ptr.vmem [resolvable:$true] %s28_s12 }
   0x6   :  { %s1547_s13 = scalar_lea.vmem %s39_s10, 32  ;;  %p1552_p1 = scmp.lt.s32.totalorder %s39_s10, %s39_s10 }
   0x7   :  { %p1548_p0 = scmp.ne.s32.totalorder %s39_s10, %s1547_s13  ;;  %p1553_p2 = scmp.lt.s32.totalorder %s1547_s13, %s1547_s13 }
   0x9   :  { %p1554_p3 = por %p1553_p2, %p1552_p1 }
   0xb   :  { %p1555_p4 = pnand %p1554_p3, %p1548_p0 }
   0xd   :  { %1558 = shalt.err (!%p1555_p4)
}
   0xe   :  { %41 = dma.hbm_to_vmem [thread:$0]  %s2066_s2, 32, %s39_s10, [#allocation6]  }
   0xf   :  { %s1567_s16 = scalar_lea.vmem %s29_s12, 32  ;;  %p1572_p6 = scmp.lt.s32.totalorder %s29_s12, %s29_s12 }
  0x10   :  { %p1568_p5 = scmp.ne.s32.totalorder %s29_s12, %s1567_s16  ;;  %p1573_p7 = scmp.lt.s32.totalorder %s1567_s16, %s1567_s16 }
  0x12   :  { %p1574_p8 = por %p1573_p7, %p1572_p6 }
  0x14   :  { %p1575_p9 = pnand %p1574_p8, %p1568_p5 }
  0x16   :  { %1578 = shalt.err (!%p1575_p9)
}
  0x17   :  { %31 = dma.hbm_to_vmem [thread:$0]  %s2065_s1, 32, %s29_s12, [#allocation3]  }
  0x18   :  { %s1691_s19 = smov [#allocation7]  }
  0x19   :  { %s49_s20 = sshll.u32 %s1691_s19, 4  ;;  %s50_s20 = int_to_ptr.vmem [resolvable:$true] %s49_s20 }
  0x1a   :  { %s1587_s21 = scalar_lea.vmem %s50_s20, 5120  ;;  %p1592_p11 = scmp.lt.s32.totalorder %s50_s20, %s50_s20 }
  0x1b   :  { %p1588_p10 = scmp.ne.s32.totalorder %s50_s20, %s1587_s21  ;;  %p1593_p12 = scmp.lt.s32.totalorder %s1587_s21, %s1587_s21 }
  0x1d   :  { %p1594_p13 = por %p1593_p12, %p1592_p11 }
  0x1f   :  { %p1595_p0 = pnand %p1594_p13, %p1588_p10 }
  0x21   :  { %1598 = shalt.err (!%p1595_p0)
}
  0x22   :  { %s1692_s2 = smov 640   ;;  %s1693_s22 = smov 40  }
  0x23   :  { %55 = dma.hbm_to_vmem [thread:$0]  %s2068_s4, 5120, %s50_s20, [#allocation6], %s1692_s2, %s1692_s2, %s1693_s22  }
  0x24   :  { %s1694_s25 = smov [#allocation8]  }
  0x25   :  { %s61_s26 = sshll.u32 %s1694_s25, 4  ;;  %s62_s26 = int_to_ptr.vmem [resolvable:$true] %s61_s26 }
  0x26   :  { %s1607_s1 = scalar_lea.vmem %s62_s26, 2560  ;;  %p1612_p2 = scmp.lt.s32.totalorder %s62_s26, %s62_s26 }
  0x27   :  { %p1608_p1 = scmp.ne.s32.totalorder %s62_s26, %s1607_s1  ;;  %p1613_p3 = scmp.lt.s32.totalorder %s1607_s1, %s1607_s1 }
  0x29   :  { %p1614_p4 = por %p1613_p3, %p1612_p2 }
  0x2b   :  { %p1615_p5 = pnand %p1614_p4, %p1608_p1 }
  0x2d   :  { %1618 = shalt.err (!%p1615_p5)
}
  0x2e   :  { %s1695_s27 = smov 256   ;;  %s1696_s28 = smov 16  }
  0x2f   :  { %67 = dma.hbm_to_vmem [thread:$0]  %s2069_s5, 2560, %s62_s26, [#allocation9], %s1695_s27, %s1695_s27, %s1696_s28  }
  0x30   :  { %1679 = dma.done.wait [#allocation3], 32  }
  0x31   :  { %1680 = vsyncadd [#allocation3], 4294967264 }
  0x32   :  { %1681 = dma.done.wait [#allocation6], 5152  }
  0x33   :  { %1682 = vsyncadd [#allocation6], 4294962144 }
  0x34   :  { %1683 = dma.done.wait [#allocation9], 2560  }
  0x35   :  { %1684 = vsyncadd [#allocation9], 4294964736  ;;  %v1697_v0 = vmov 0.0   ;;  %vm1698_vm0 = vmmov 0   ;;  %v182_v1 = vld [vmem:[#allocation7 + $0x120] sm:$0xff]  ;;  %v181_v2 = vld [vmem:[#allocation7 + $0xf8] sm:$0xff]  ;;  %v267_v22 = vlaneseq }
  0x36   :  { %1407 = vmatprep.subr.mxu1 %v1697_v0  ;;  %1423 = vmatprep.mubr.msk.f32.mxu1 %vm1698_vm0, %v1697_v0  ;;  %v91_v3 = vld [vmem:[#allocation7 + $0x118] sm:$0xff]  ;;  %v90_v4 = vld [vmem:[#allocation7 + $0xf0] sm:$0xff]  ;;  %v89_v6 = vld [vmem:[#allocation7 + $0xc8] sm:$0xff]  ;;  %vm92_vm1 = vcmask 523264   ;;  %v1699_v20 = vmov 1966171168  }
  0x37   :  { %1408 = vmatpush3.msra.mxu1 %v182_v1  ;;  %1388 = vmatprep.subr.mxu0 %v91_v3  ;;  %v180_v5 = vld [vmem:[#allocation7 + $0xd0] sm:$0xff]  ;;  %v179_v7 = vld [vmem:[#allocation7 + $0xa8] sm:$0xff]  ;;  %v88_v8 = vld [vmem:[#allocation7 + $0xa0] sm:$0xff]  ;;  %v265_v21 = vunpack.c.l.s4 %v1699_v20  ;;  %v1798_v24 = vshrl.u32 %v267_v22, 7  ;;  %vm309_vm2 = vcmask 130048   ;;  %v1814_v48 = vand.u32 127, %v267_v22 }
  0x38   :  { %1409 = vmatprep.subr.mxu1 %v1697_v0  ;;  %1389 = vmatpush3.msra.mxu0 %v91_v3  ;;  %v178_v9 = vld [vmem:[#allocation7 + $0x80] sm:$0xff]  ;;  %v87_v10 = vld [vmem:[#allocation7 + $0x78] sm:$0xff]  ;;  %v86_v12 = vld [vmem:[#allocation7 + $0x50] sm:$0xff]  ;;  %vm328_vm3 = vcmask 1041409   ;;  %vm331_vm4 = vcmask 58368   ;;  %v1700_v56 = vmov 0  }
  0x39   :  { %1410 = vmatpush3.msra.mxu1 %v181_v2  ;;  %1390 = vmatprep.subr.mxu0 %v90_v4  ;;  %v177_v11 = vld [vmem:[#allocation7 + $0x58] sm:$0xff]  ;;  %v176_v13 = vld [vmem:[#allocation7 + $0x30] sm:$0xff]  ;;  %v85_v14 = vld [vmem:[#allocation7 + $0x28] sm:$0xff]  ;;  %v266_v23 = vunpack.c.0.s8 %v265_v21  ;;  %v1805_v31 = vsub.s32 0, %v1798_v24  ;;  %v322_v50 = vsub.s32 %v1814_v48, %v1798_v24  ;;  %v1821_v57 = vsub.s32 1, %v1798_v24  ;;  %s1702_s19 = smov [#allocation11]  }
  0x3a   :  { %1411 = vmatprep.subr.mxu1 %v1697_v0  ;;  %1391 = vmatpush3.msra.mxu0 %v90_v4  ;;  %v175_v15 = vld [vmem:[#allocation7 + $0x8] sm:$0xff]  ;;  %v84_v16 = vld [vmem:[#allocation7] sm:$0xff]  ;;  %v1777_v17 = vld [vmem:[#allocation2] sm:$0x3]  ;;  %vm460_vm6 = vcmask 654336   ;;  %vm1165_vm7 = vcmask 1040384  }
  0x3b   :  { %1412 = vmatpush3.msra.mxu1 %v180_v5  ;;  %1392 = vmatprep.subr.mxu0 %v89_v6  ;;  %v1783_v18 = vld [vmem:[%s2067_s3] sm:$0xff]  ;;  %v1788_v19 = vld [vmem:[%s2067_s3 + $0x8] sm:$0xff]  ;;  %v269_v26 = vsub.s32 %v266_v23, %v1798_v24  ;;  %v446_v22 = vld [vmem:[#allocation8 + $0x90] sm:$0xff]  ;;  %vm1168_vm8 = vcmask 1041408   ;;  %vm1275_vm9 = vcmask 1044484   ;;  %vm1171_vm10 = vcmask 1042432  }
  0x3c   :  { %1413 = vmatprep.subr.mxu1 %v1697_v0  ;;  %1393 = vmatpush3.msra.mxu0 %v89_v6  ;;  %v1341_v25 = vld [vmem:[%s2070_s6] ss:$0 sm:$0xff]  ;;  %v1343_v41 = vld [vmem:[%s2070_s6 + $0x1] ss:$0 sm:$0xff]  ;;  %v445_v23 = vld [vmem:[#allocation8 + $0x88] sm:$0xff]  ;;  %vm1278_vm11 = vcmask 520195  }
  0x3d   :  { %1414 = vmatpush3.msra.mxu1 %v179_v7  ;;  %1394 = vmatprep.subr.mxu0 %v88_v8  ;;  %v447_v21 = vld [vmem:[#allocation8 + $0x98] sm:$0xff]  ;;  %s1311_s20 = sshll.u32 %s1702_s19, 4  ;;  %s1312_s20 = int_to_ptr.vmem [resolvable:$true] %s1311_s20 }
  0x3e   :  { %1415 = vmatprep.subr.mxu1 %v1697_v0  ;;  %1395 = vmatpush3.msra.mxu0 %v88_v8  ;;  %s1619_s21 = scalar_lea.vmem %s1312_s20, 32  ;;  %p1624_p7 = scmp.lt.s32.totalorder %s1312_s20, %s1312_s20 }
  0x3f   :  { %1416 = vmatpush3.msra.mxu1 %v178_v9  ;;  %1396 = vmatprep.subr.mxu0 %v87_v10  ;;  %p1620_p6 = scmp.ne.s32.totalorder %s1312_s20, %s1619_s21  ;;  %p1625_p8 = scmp.lt.s32.totalorder %s1619_s21, %s1619_s21 }
  0x40   :  { %1417 = vmatprep.subr.mxu1 %v1697_v0  ;;  %1397 = vmatpush3.msra.mxu0 %v87_v10  ;;  %v414_v10 = vld [vmem:[%s2064_s0] sm:$0xff]  ;;  %s1701_s0 = smov 64  }
  0x41   :  { %1418 = vmatpush3.msra.mxu1 %v177_v11  ;;  %1398 = vmatprep.subr.mxu0 %v86_v12  ;;  %p1626_p9 = por %p1625_p8, %p1624_p7 }
  0x42   :  { %1419 = vmatprep.subr.mxu1 %v1697_v0  ;;  %1399 = vmatpush3.msra.mxu0 %v86_v12 }
  0x43   :  { %1420 = vmatpush3.msra.mxu1 %v176_v13  ;;  %1400 = vmatprep.subr.mxu0 %v85_v14  ;;  %p1627_p10 = pnand %p1626_p9, %p1620_p6 }
  0x44   :  { %1421 = vmatprep.subr.mxu1 %v1697_v0  ;;  %1401 = vmatpush3.msra.mxu0 %v85_v14 }
  0x45   :  { %1422 = vmatpush3.msra.mxu1 %v175_v15  ;;  %1402 = vmatprep.subr.mxu0 %v84_v16 }
  0x46   :  { %1424 = vmatmul.mubr.msk.f32.vlgmr.msra.gmra.mxu1 %vm92_vm1, %v1777_v17  ;;  %1403 = vmatpush3.msra.mxu0 %v84_v16 }
  0x47   :  { %1404 = vmatprep.mubr.msk.f32.mxu0 %vm92_vm1, %v1783_v18  ;;  %622 = vmatprep.mubr.f32.mxu1 %v1697_v0 }
  0x48   :  { %1405 = vmatmul.mubr.msk.f32.vlgmr.msra.gmra.mxu0 %vm92_vm1, %v1788_v19  ;;  %1462 = vset.pattern.permute.xlu0 %v1700_v56 }
  0x49   :  { %528 = vmatprep.mubr.f32.mxu0 %v1697_v0  ;;  %1461 = vset.pattern.permute.xlu1 %v1700_v56  ;;  %v430_v56 = vld [vmem:[#allocation8 + $0x10] sm:$0xff] }
  0x4a   :  { %476 = vmatprep.subr.mxu0 %v447_v21 }
  0x4b   :  { %477 = vmatpush1.msra.mxu0 %v446_v22 }
  0x4c   :  { %478 = vmatprep.subr.mxu0 %v445_v23 }
 0x106   :  { %v259_v27 = vpop.f32.mrf.mxu1 }
 0x107   :  { %v260_v28 = vadd.f32 %v1341_v25, %v259_v27  ;;  %v444_v25 = vld [vmem:[#allocation8 + $0x80] sm:$0xff]  ;;  %v443_v27 = vld [vmem:[#allocation8 + $0x78] sm:$0xff] }
 0x108   :  { %v1425_v29 = vpop.f32.mrf.mxu1  ;;  %v1406_v32 = vpop.f32.mrf.mxu0  ;;  %479 = vmatpush1.msra.mxu0 %v444_v25 }
 0x109   :  { %v270_v30 = vrot.slane %v260_v28, %v269_v26  ;;  %v1835_v28 = vld [vmem:[#allocation7 + $0x128] sm:$0xff]  ;;  %v442_v29 = vld [vmem:[#allocation8 + $0x70] sm:$0xff]  ;;  %480 = vmatprep.subr.mxu0 %v443_v27 }
 0x10a   :  { %v165_v37 = vpop.f32.mrf.mxu0  ;;  %481 = vmatpush1.msra.mxu0 %v442_v29 }
 0x10b   :  { %v271_v33 = vcombine.high %v270_v30, %v270_v30  ;;  %v278_v34 = vrot.slane %v270_v30, %v269_v26  ;;  %v1838_v30 = vld [vmem:[#allocation7 + $0x108] sm:$0xff] }
 0x10d   :  { %v285_v35 = vrot.slane %v271_v33, %v269_v26  ;;  %v289_v36 = vrot.slane %v278_v34, %v1805_v31  ;;  %v1832_v26 = vld [vmem:[#allocation7 + $0x130] sm:$0xff]  ;;  %v441_v33 = vld [vmem:[#allocation8 + $0x68] sm:$0xff]  ;;  %v1843_v34 = vld [vmem:[#allocation7 + $0xe0] sm:$0xff] }
 0x10e   :  { %574 = vmatprep.subr.mxu1 %v1832_v26  ;;  %482 = vmatprep.subr.mxu0 %v441_v33 }
 0x10f   :  { %v293_v38 = vrot.slane %v285_v35, %v1805_v31  ;;  %v296_v39 = vadd.f32 %v289_v36, %v165_v37  ;;  %575 = vmatpush1.msra.mxu1 %v1835_v28  ;;  %v440_v35 = vld [vmem:[#allocation8 + $0x60] sm:$0xff]  ;;  %v1846_v36 = vld [vmem:[#allocation7 + $0xd8] sm:$0xff] }
 0x110   :  { %576 = vmatprep.subr.mxu1 %v1838_v30  ;;  %v1848_v37 = vld [vmem:[#allocation7 + $0xb8] sm:$0xff]  ;;  %483 = vmatpush1.msra.mxu0 %v440_v35 }
 0x111   :  { %v297_v40 = vadd.f32 %v1406_v32, %v293_v38  ;;  %1463 = vtanh.f32 %v296_v39  ;;  %v1840_v32 = vld [vmem:[#allocation7 + $0x100] sm:$0xff]  ;;  %v439_v38 = vld [vmem:[#allocation8 + $0x58] sm:$0xff]  ;;  %v1851_v39 = vld [vmem:[#allocation7 + $0xb0] sm:$0xff] }
 0x112   :  { %577 = vmatpush1.msra.mxu1 %v1840_v32  ;;  %484 = vmatprep.subr.mxu0 %v439_v38 }
 0x113   :  { %1465 = vtanh.f32 %v297_v40  ;;  %578 = vmatprep.subr.mxu1 %v1843_v34  ;;  %v438_v40 = vld [vmem:[#allocation8 + $0x50] sm:$0xff] }
 0x114   :  { %579 = vmatpush1.msra.mxu1 %v1846_v36  ;;  %485 = vmatpush1.msra.mxu0 %v438_v40 }
 0x115   :  { %580 = vmatprep.subr.mxu1 %v1848_v37 }
 0x116   :  { %581 = vmatpush1.msra.mxu1 %v1851_v39 }
 0x11e   :  { %v1464_v42 = vpop.eup %1463 }
 0x11f   :  { %v307_v43 = vmul.f32 %v1464_v42, %v1343_v41  ;;  %v437_v42 = vld [vmem:[#allocation8 + $0x48] sm:$0xff] }
 0x120   :  { %v1466_v44 = vpop.eup %1465  ;;  %486 = vmatprep.subr.mxu0 %v437_v42 }
 0x121   :  { %v310_v45 = vsel %vm309_vm2, %v307_v43, 0.0  ;;  %v308_v46 = vmul.f32 %v1466_v44, %v1343_v41  ;;  %v1854_v41 = vld [vmem:[#allocation7 + $0x90] sm:$0xff]  ;;  %v1857_v43 = vld [vmem:[#allocation7 + $0x88] sm:$0xff]  ;;  %v436_v44 = vld [vmem:[#allocation8 + $0x40] sm:$0xff] }
 0x122   :  { %311 = vadd.xlane.f32.xlu0 %v310_v45  ;;  %v1860_v45 = vld [vmem:[#allocation7 + $0x68] sm:$0xff]  ;;  %582 = vmatprep.subr.mxu1 %v1854_v41 }
 0x123   :  { %v313_v47 = vsel %vm309_vm2, %v308_v46, 0.0  ;;  %v435_v46 = vld [vmem:[#allocation8 + $0x38] sm:$0xff]  ;;  %583 = vmatpush1.msra.mxu1 %v1857_v43  ;;  %487 = vmatpush1.msra.mxu0 %v436_v44 }
 0x124   :  { %584 = vmatprep.subr.mxu1 %v1860_v45  ;;  %488 = vmatprep.subr.mxu0 %v435_v46 }
 0x126   :  { %314 = vadd.xlane.f32.xlu0 %v313_v47  ;;  %v1863_v47 = vld [vmem:[#allocation7 + $0x60] sm:$0xff] }
 0x127   :  { %585 = vmatpush1.msra.mxu1 %v1863_v47 }
 0x1ab   :  { %v312_v49 = vpop.xlane.xlu0 %311 }
 0x1ac   :  { %v323_v52 = vrot.slane %v312_v49, %v322_v50 }
 0x1af   :  { %v315_v51 = vpop.xlane.xlu0 %314 }
 0x1b0   :  { %v327_v53 = vrot.slane %v315_v51, %v322_v50 }
 0x1b2   :  { %v329_v54 = vsel %vm328_vm3, %v327_v53, %v323_v52  ;;  %v1869_v52 = vld [vmem:[#allocation7 + $0x38] sm:$0xff]  ;;  %v432_v53 = vld [vmem:[#allocation8 + $0x20] sm:$0xff] }
 0x1b3   :  { %v332_v55 = vsel %vm331_vm4, %v329_v54, -inf  ;;  %v1872_v54 = vld [vmem:[#allocation7 + $0x18] sm:$0xff] }
 0x1b4   :  { %333 = vmax.xlane.f32.xlu1 %v332_v55  ;;  %v431_v55 = vld [vmem:[#allocation8 + $0x18] sm:$0xff] }
 0x23d   :  { %v334_v58 = vpop.xlane.xlu1 %333 }
 0x23e   :  { %v339_v59 = vrot.slane %v334_v58, %v1805_v31  ;;  %v343_v60 = vrot.slane %v334_v58, %v1821_v57  ;;  %v429_v58 = vld [vmem:[#allocation8 + $0x8] sm:$0xff] }
 0x240   :  { %v346_v61 = vsub.f32 %v312_v49, %v339_v59  ;;  %v347_v62 = vsub.f32 %v315_v51, %v343_v60  ;;  %v434_v49 = vld [vmem:[#allocation8 + $0x30] sm:$0xff]  ;;  %v433_v51 = vld [vmem:[#allocation8 + $0x28] sm:$0xff] }
 0x241   :  { %489 = vmatpush1.msra.mxu0 %v434_v49 }
 0x242   :  { %v348_v63 = vmul.f32 1.442695, %v346_v61  ;;  %v350_v1 = vmul.f32 1.442695, %v347_v62  ;;  %490 = vmatprep.subr.mxu0 %v433_v51 }
 0x243   :  { %491 = vmatpush1.msra.mxu0 %v432_v53 }
 0x244   :  { %1467 = vpow2.f32 %v348_v63  ;;  %492 = vmatprep.subr.mxu0 %v431_v55 }
 0x245   :  { %1469 = vpow2.f32 %v350_v1  ;;  %493 = vmatpush1.msra.mxu0 %v430_v56 }
 0x246   :  { %494 = vmatprep.subr.mxu0 %v429_v58 }
 0x251   :  { %v1468_v2 = vpop.eup %1467 }
 0x252   :  { %v1470_v3 = vpop.eup %1469  ;;  %355 = vperm.xlu1 %1461, %v1468_v2  }
 0x253   :  { %358 = vperm.xlu0 %1462, %v1470_v3  }
 0x2cd   :  { %v356_v4 = vpop.permute.xlu1 %355 }
 0x2ce   :  { %v359_v5 = vpop.permute.xlu0 %358  ;;  %v363_v6 = vrot.slane %v356_v4, %v322_v50 }
 0x2cf   :  { %v367_v7 = vrot.slane %v359_v5, %v322_v50  ;;  %v1866_v50 = vld [vmem:[#allocation7 + $0x40] sm:$0xff] }
 0x2d0   :  { %586 = vmatprep.subr.mxu1 %v1866_v50 }
 0x2d1   :  { %v368_v8 = vsel %vm328_vm3, %v367_v7, %v363_v6  ;;  %587 = vmatpush1.msra.mxu1 %v1869_v52  ;;  %v428_v6 = vld [vmem:[#allocation8] sm:$0xff]  ;;  %v1881_v7 = vld [vmem:[#allocation7 + $0x10] sm:$0xff] }
 0x2d2   :  { %v370_v9 = vsel %vm331_vm4, %v368_v8, 0.0  ;;  %588 = vmatprep.subr.mxu1 %v1872_v54  ;;  %495 = vmatpush1.msra.mxu0 %v428_v6 }
 0x2d3   :  { %371 = vadd.xlane.f32.xlu1 %v370_v9  ;;  %589 = vmatpush1.msra.mxu1 %v1881_v7 }
 0x2d4   :  { %1346 = vmatmul.mubr.msk.f32.vlgmr.msra.gmra.mxu1 %vm92_vm1, %v1777_v17  ;;  %730 = vmatprep.subr.mxu1 %v1832_v26 }
 0x2d5   :  { %731 = vmatpush1.msra.mxu1 %v1835_v28  ;;  %778 = vmatprep.mubr.f32.mxu1 %v1697_v0 }
 0x2d6   :  { %732 = vmatprep.subr.mxu1 %v1838_v30  ;;  %884 = vmatprep.subr.mxu0 %v1832_v26 }
 0x2d7   :  { %733 = vmatpush1.msra.mxu1 %v1840_v32 }
 0x2d8   :  { %734 = vmatprep.subr.mxu1 %v1843_v34 }
 0x2d9   :  { %735 = vmatpush1.msra.mxu1 %v1846_v36 }
 0x2da   :  { %736 = vmatprep.subr.mxu1 %v1848_v37 }
 0x2db   :  { %737 = vmatpush1.msra.mxu1 %v1851_v39 }
 0x2dc   :  { %738 = vmatprep.subr.mxu1 %v1854_v41 }
 0x2dd   :  { %739 = vmatpush1.msra.mxu1 %v1857_v43 }
 0x2de   :  { %740 = vmatprep.subr.mxu1 %v1860_v45 }
 0x2df   :  { %741 = vmatpush1.msra.mxu1 %v1863_v47 }
 0x2e0   :  { %742 = vmatprep.subr.mxu1 %v1866_v50 }
 0x2e1   :  { %743 = vmatpush1.msra.mxu1 %v1869_v52 }
 0x2e2   :  { %744 = vmatprep.subr.mxu1 %v1872_v54 }
 0x2e3   :  { %745 = vmatpush1.msra.mxu1 %v1881_v7 }
 0x2e4   :  { %416 = vperm.xlu1 %1461, %v414_v10   ;;  %1039 = vmatprep.subr.mxu1 %v1832_v26 }
 0x35c   :  { %v372_v11 = vpop.xlane.xlu1 %371 }
 0x35d   :  { %v377_v12 = vrot.slane %v372_v11, %v1805_v31  ;;  %v381_v13 = vrot.slane %v372_v11, %v1821_v57 }
 0x35f   :  { %1471 = vrcp.f32 %v377_v12 }
 0x360   :  { %1473 = vrcp.f32 %v381_v13 }
 0x36c   :  { %v1472_v14 = vpop.eup %1471 }
 0x36d   :  { %v385_v15 = vmul.f32 %v1472_v14, %v1468_v2  ;;  %v1474_v16 = vpop.eup %1473 }
 0x36e   :  { %v387_v20 = vmul.f32 %v1474_v16, %v1470_v3  ;;  %v417_v16 = vpop.permute.xlu1 %416 }
 0x36f   :  { %390 = vperm.xlu0 %1462, %v385_v15   ;;  %vm418_vm5 = vcmp.eq.s32.totalorder %v1814_v48, %v417_v16  ;;  %v448_v48 = vld [vmem:[%s2070_s6 + $0x2] sm:$0x3] }
 0x370   :  { %v453_v25 = vrot.slane %v448_v48, %v1805_v31  ;;  %v457_v26 = vrot.slane %v448_v48, %v1821_v57 }
 0x373   :  { %395 = vperm.xlu0 %1462, %v387_v20   ;;  %v1344_v20 = vsel %vm418_vm5, 1.0, %v1697_v0 }
 0x394   :  { %v624_v23 = vpop.f32.mrf.mxu1 }
 0x396   :  { %v626_v29 = vpop.f32.mrf.mxu1 }
 0x397   :  { %v631_v40 = vcombine.low %v624_v23, %v626_v29 }
 0x399   :  { %v632_v46 = vrot.slane %v631_v40, 1 }
 0x3ea   :  { %v391_v59 = vpop.permute.xlu0 %390 }
 0x3eb   :  { %v398_v60 = vmul.f32 %v391_v59, %v1783_v18  ;;  %v1884_v18 = vld [vmem:[#allocation5] sm:$0x3] }
 0x3ed   :  { %v400_v61 = vsel %vm92_vm1, %v398_v60, 0.0 }
 0x3ee   :  { %v401_v62 = vrot.slane %v400_v61, 4  ;;  %v396_v63 = vpop.permute.xlu0 %395 }
 0x3ef   :  { %v399_v1 = vmul.f32 %v396_v63, %v1788_v19  ;;  %v662_v19 = vrot.slane %v1884_v18, 1 }
 0x3f0   :  { %v402_v2 = vadd.f32 %v401_v62, %v400_v61 }
 0x3f1   :  { %v407_v3 = vsel %vm92_vm1, %v399_v1, 0.0  ;;  %665 = vrot.lane.b32.xlu1 %v662_v19, %s1701_s0 }
 0x3f2   :  { %v403_v4 = vrot.slane %v402_v2, 2  ;;  %v408_v5 = vrot.slane %v407_v3, 4 }
 0x3f4   :  { %v409_v8 = vadd.f32 %v408_v5, %v407_v3  ;;  %v404_v9 = vadd.f32 %v403_v4, %v402_v2 }
 0x3f6   :  { %v410_v10 = vrot.slane %v409_v8, 2  ;;  %v405_v11 = vrot.slane %v404_v9, 1 }
 0x3f8   :  { %v411_v12 = vadd.f32 %v410_v10, %v409_v8  ;;  %v406_v13 = vadd.f32 %v405_v11, %v404_v9 }
 0x3fa   :  { %v412_v17 = vrot.slane %v411_v12, 1 }
 0x3fc   :  { %v413_v14 = vadd.f32 %v412_v17, %v411_v12 }
 0x3fe   :  { %v423_v15 = vcombine.low %v406_v13, %v413_v14 }
 0x400   :  { %424 = vrot.lane.b32.xlu0 %v423_v15, %s1696_s28 }
 0x463   :  { %v666_v19 = vpop.permute.xlu1 %665 }
 0x472   :  { %v425_v21 = vpop.permute.xlu0 %424 }
 0x473   :  { %v427_v22 = vsel %vm309_vm2, %v1344_v20, %v425_v21 }
 0x474   :  { %1345 = vmatmul.mubr.msk.f32.vlgmr.msra.gmra.mxu0 %vm460_vm6, %v427_v22 }
 0x475   :  { %885 = vmatpush1.msra.mxu0 %v1835_v28  ;;  %932 = vmatprep.mubr.f32.mxu0 %v1697_v0 }
 0x476   :  { %886 = vmatprep.subr.mxu0 %v1838_v30 }
 0x477   :  { %887 = vmatpush1.msra.mxu0 %v1840_v32 }
 0x478   :  { %888 = vmatprep.subr.mxu0 %v1843_v34 }
 0x479   :  { %889 = vmatpush1.msra.mxu0 %v1846_v36 }
 0x47a   :  { %890 = vmatprep.subr.mxu0 %v1848_v37 }
 0x47b   :  { %891 = vmatpush1.msra.mxu0 %v1851_v39 }
 0x47c   :  { %892 = vmatprep.subr.mxu0 %v1854_v41 }
 0x47d   :  { %893 = vmatpush1.msra.mxu0 %v1857_v43 }
 0x47e   :  { %894 = vmatprep.subr.mxu0 %v1860_v45 }
 0x47f   :  { %895 = vmatpush1.msra.mxu0 %v1863_v47 }
 0x480   :  { %896 = vmatprep.subr.mxu0 %v1866_v50 }
 0x481   :  { %897 = vmatpush1.msra.mxu0 %v1869_v52 }
 0x482   :  { %898 = vmatprep.subr.mxu0 %v1872_v54 }
 0x483   :  { %899 = vmatpush1.msra.mxu0 %v1881_v7 }
 0x484   :  { %1426 = vmatprep.subr.mxu0 %v1697_v0 }
 0x534   :  { %v530_v27 = vpop.f32.mrf.mxu0 }
 0x535   :  { %v531_v35 = vadd.f32 %v530_v27, %v453_v25 }
 0x536   :  { %v532_v33 = vpop.f32.mrf.mxu0 }
 0x537   :  { %v533_v38 = vadd.f32 %v532_v33, %v457_v26 }
 0x539   :  { %v1935_v42 = vcombine.low %v531_v35, %v533_v38  ;;  %v1937_v44 = vcombine.high %v531_v35, %v533_v38 }
 0x53b   :  { %v635_v49 = vadd.f32 %v631_v40, %v1935_v42  ;;  %v636_v51 = vadd.f32 %v632_v46, %v1937_v44 }
 0x53d   :  { %651 = vrot.lane.b32.xlu0 %v635_v49, %s1701_s0  ;;  %v1347_v53 = vmul.f32 -1.442695, %v635_v49  ;;  %v1348_v55 = vmul.f32 -1.442695, %v636_v51 }
 0x53f   :  { %1475 = vpow2.f32 %v1347_v53 }
 0x540   :  { %1477 = vpow2.f32 %v1348_v55 }
 0x541   :  { %653 = vrot.lane.b32.xlu0 %v636_v51, %s1701_s0 }
 0x545   :  { %663 = vrot.lane.b32.xlu0 %v1884_v18, %s1701_s0 }
 0x54c   :  { %v1476_v56 = vpop.eup %1475 }
 0x54d   :  { %v643_v58 = vadd.f32 1.0, %v1476_v56  ;;  %v1478_v59 = vpop.eup %1477 }
 0x54e   :  { %v644_v62 = vadd.f32 1.0, %v1478_v59 }
 0x54f   :  { %1479 = vrcp.f32 %v643_v58 }
 0x55c   :  { %v1480_v2 = vpop.eup %1479 }
 0x55d   :  { %v687_v20 = vrot.slane %v1480_v2, 4 }
 0x5af   :  { %v652_v60 = vpop.permute.xlu0 %651 }
 0x5b0   :  { %v655_v61 = vrot.slane %v652_v60, 4 }
 0x5b2   :  { %1481 = vtanh.f32 %v655_v61 }
 0x5b3   :  { %v654_v63 = vpop.permute.xlu0 %653  ;;  %1483 = vrcp.f32 %v644_v62 }
 0x5b4   :  { %v656_v1 = vrot.slane %v654_v63, 4 }
 0x5b6   :  { %1485 = vtanh.f32 %v656_v1 }
 0x5b7   :  { %v664_v9 = vpop.permute.xlu0 %663 }
 0x5b8   :  { %v669_v18 = vmul.f32 %v1480_v2, %v664_v9 }
 0x5bf   :  { %v1482_v3 = vpop.eup %1481 }
 0x5c0   :  { %v671_v4 = vmul.f32 %v1482_v3, %v1480_v2  ;;  %v1484_v5 = vpop.eup %1483 }
 0x5c1   :  { %v670_v12 = vmul.f32 %v1484_v5, %v666_v19  ;;  %v688_v22 = vrot.slane %v1484_v5, 4 }
 0x5c2   :  { %675 = vrot.lane.b32.xlu0 %v671_v4, %s1701_s0 }
 0x5c3   :  { %v1486_v6 = vpop.eup %1485 }
 0x5c4   :  { %v672_v8 = vmul.f32 %v1486_v6, %v1484_v5 }
 0x5c6   :  { %677 = vrot.lane.b32.xlu1 %v672_v8, %s1701_s0 }
 0x634   :  { %v676_v10 = vpop.permute.xlu0 %675 }
 0x635   :  { %v1947_v11 = vadd.f32 %v676_v10, %v669_v18 }
 0x637   :  { %1487 = vtanh.f32 %v1947_v11  ;;  %v819_v51 = vrot.slane %v1947_v11, 7 }
 0x638   :  { %v678_v17 = vpop.permute.xlu1 %677 }
 0x639   :  { %v1950_v13 = vadd.f32 %v678_v17, %v670_v12 }
 0x63b   :  { %1489 = vtanh.f32 %v1950_v13  ;;  %v820_v49 = vrot.slane %v1950_v13, 7 }
 0x644   :  { %v1488_v14 = vpop.eup %1487 }
 0x645   :  { %693 = vrot.lane.b32.xlu0 %v1488_v14, %s1701_s0 }
 0x648   :  { %v1490_v15 = vpop.eup %1489 }
 0x649   :  { %695 = vrot.lane.b32.xlu1 %v1490_v15, %s1701_s0 }
 0x6b7   :  { %v694_v16 = vpop.permute.xlu0 %693 }
 0x6b8   :  { %v1955_v21 = vmul.f32 %v694_v16, %v687_v20 }
 0x6ba   :  { %v706_v25 = vrot.slane %v1955_v21, %v1805_v31 }
 0x6bb   :  { %v696_v48 = vpop.permute.xlu1 %695 }
 0x6bc   :  { %v1957_v23 = vmul.f32 %v696_v48, %v688_v22 }
 0x6be   :  { %v710_v26 = vrot.slane %v1957_v23, %v1805_v31 }
 0x6c0   :  { %v711_v27 = vsel %vm328_vm3, %v710_v26, %v706_v25 }
 0x6c1   :  { %1349 = vmatmul.mubr.msk.f32.vlgmr.msra.gmra.mxu1 %vm92_vm1, %v711_v27 }
 0x6c2   :  { %1040 = vmatpush1.msra.mxu1 %v1835_v28  ;;  %1087 = vmatprep.mubr.f32.mxu1 %v1697_v0 }
 0x6c3   :  { %1041 = vmatprep.subr.mxu1 %v1838_v30 }
 0x6c4   :  { %1042 = vmatpush1.msra.mxu1 %v1840_v32 }
 0x6c5   :  { %1043 = vmatprep.subr.mxu1 %v1843_v34 }
 0x6c6   :  { %1044 = vmatpush1.msra.mxu1 %v1846_v36 }
 0x6c7   :  { %1045 = vmatprep.subr.mxu1 %v1848_v37 }
 0x6c8   :  { %1046 = vmatpush1.msra.mxu1 %v1851_v39 }
 0x6c9   :  { %1047 = vmatprep.subr.mxu1 %v1854_v41 }
 0x6ca   :  { %1048 = vmatpush1.msra.mxu1 %v1857_v43 }
 0x6cb   :  { %1049 = vmatprep.subr.mxu1 %v1860_v45 }
 0x6cc   :  { %1050 = vmatpush1.msra.mxu1 %v1863_v47 }
 0x6cd   :  { %1051 = vmatprep.subr.mxu1 %v1866_v50 }
 0x6ce   :  { %1052 = vmatpush1.msra.mxu1 %v1869_v52 }
 0x6cf   :  { %1053 = vmatprep.subr.mxu1 %v1872_v54 }
 0x6d0   :  { %1054 = vmatpush1.msra.mxu1 %v1881_v7 }
 0x781   :  { %v780_v31 = vpop.f32.mrf.mxu1 }
 0x783   :  { %v782_v28 = vpop.f32.mrf.mxu1 }
 0x784   :  { %v787_v30 = vcombine.low %v780_v31, %v782_v28 }
 0x786   :  { %v788_v32 = vrot.slane %v787_v30, 7  ;;  %v792_v34 = vadd.f32 %v787_v30, %v1937_v44 }
 0x788   :  { %809 = vrot.lane.b32.xlu1 %v792_v34, %s1701_s0  ;;  %v791_v36 = vadd.f32 %v788_v32, %v1935_v42  ;;  %v1351_v37 = vmul.f32 -1.442695, %v792_v34 }
 0x78a   :  { %807 = vrot.lane.b32.xlu0 %v791_v36, %s1701_s0  ;;  %v1350_v39 = vmul.f32 -1.442695, %v791_v36  ;;  %1491 = vpow2.f32 %v1351_v37 }
 0x78c   :  { %1493 = vpow2.f32 %v1350_v39 }
 0x797   :  { %v1492_v41 = vpop.eup %1491 }
 0x798   :  { %v800_v45 = vadd.f32 1.0, %v1492_v41 }
 0x799   :  { %v1494_v43 = vpop.eup %1493 }
 0x79a   :  { %v799_v47 = vadd.f32 1.0, %v1494_v43  ;;  %1495 = vrcp.f32 %v800_v45 }
 0x7a7   :  { %v1496_v29 = vpop.eup %1495 }
 0x7a8   :  { %v824_v53 = vmul.f32 %v1496_v29, %v820_v49  ;;  %v842_v63 = vrot.slane %v1496_v29, 4 }
 0x7fa   :  { %v810_v50 = vpop.permute.xlu1 %809 }
 0x7fb   :  { %v812_v52 = vrot.slane %v810_v50, 4 }
 0x7fc   :  { %v808_v54 = vpop.permute.xlu0 %807 }
 0x7fd   :  { %1497 = vtanh.f32 %v812_v52  ;;  %v811_v7 = vrot.slane %v808_v54, 4 }
 0x7fe   :  { %1499 = vrcp.f32 %v799_v47 }
 0x7ff   :  { %1501 = vtanh.f32 %v811_v7 }
 0x80a   :  { %v1498_v33 = vpop.eup %1497 }
 0x80b   :  { %v1500_v35 = vpop.eup %1499  ;;  %v826_v38 = vmul.f32 %v1498_v33, %v1496_v29  ;;  %v1014_v33 = vsub.s32 2, %v1798_v24 }
 0x80c   :  { %v1502_v40 = vpop.eup %1501  ;;  %v823_v58 = vmul.f32 %v1500_v35, %v819_v51  ;;  %v841_v3 = vrot.slane %v1500_v35, 4 }
 0x80d   :  { %831 = vrot.lane.b32.xlu1 %v826_v38, %s1701_s0  ;;  %v825_v46 = vmul.f32 %v1502_v40, %v1500_v35 }
 0x80f   :  { %829 = vrot.lane.b32.xlu0 %v825_v46, %s1701_s0 }
 0x87f   :  { %v832_v55 = vpop.permute.xlu1 %831 }
 0x880   :  { %v836_v56 = vadd.f32 %v832_v55, %v824_v53 }
 0x881   :  { %v830_v59 = vpop.permute.xlu0 %829 }
 0x882   :  { %1503 = vtanh.f32 %v836_v56  ;;  %v835_v60 = vadd.f32 %v830_v59, %v823_v58  ;;  %v975_v37 = vrot.slane %v836_v56, 7 }
 0x884   :  { %1505 = vtanh.f32 %v835_v60  ;;  %v974_v39 = vrot.slane %v835_v60, 7 }
 0x88f   :  { %v1504_v61 = vpop.eup %1503 }
 0x890   :  { %849 = vrot.lane.b32.xlu1 %v1504_v61, %s1701_s0 }
 0x891   :  { %v1506_v62 = vpop.eup %1505 }
 0x892   :  { %847 = vrot.lane.b32.xlu0 %v1506_v62, %s1701_s0 }
 0x902   :  { %v850_v1 = vpop.permute.xlu1 %849 }
 0x903   :  { %v1991_v2 = vmul.f32 %v850_v1, %v842_v63 }
 0x904   :  { %v848_v4 = vpop.permute.xlu0 %847 }
 0x905   :  { %v1993_v5 = vmul.f32 %v848_v4, %v841_v3  ;;  %v864_v6 = vrot.slane %v1991_v2, %v1821_v57  ;;  %v1167_v49 = vsel %vm1165_vm7, %v1957_v23, %v1991_v2 }
 0x907   :  { %v860_v8 = vrot.slane %v1993_v5, %v1821_v57  ;;  %v1166_v53 = vsel %vm1165_vm7, %v1955_v21, %v1993_v5 }
 0x909   :  { %v865_v9 = vsel %vm328_vm3, %v864_v6, %v860_v8 }
 0x90a   :  { %1352 = vmatmul.mubr.msk.f32.vlgmr.msra.gmra.mxu0 %vm92_vm1, %v865_v9 }
 0x90b   :  { %1442 = vmatprep.mubr.msk.f32.mxu0 %vm1698_vm0, %v1697_v0 }
 0x9ca   :  { %v934_v18 = vpop.f32.mrf.mxu0 }
 0x9cc   :  { %v936_v19 = vpop.f32.mrf.mxu0 }
 0x9cd   :  { %v941_v10 = vcombine.low %v934_v18, %v936_v19 }
 0x9cf   :  { %v942_v11 = vrot.slane %v941_v10, 6  ;;  %v943_v12 = vrot.slane %v941_v10, 7 }
 0x9d1   :  { %v947_v17 = vadd.f32 %v943_v12, %v1937_v44  ;;  %v946_v13 = vadd.f32 %v942_v11, %v1935_v42 }
 0x9d3   :  { %964 = vrot.lane.b32.xlu1 %v947_v17, %s1701_s0  ;;  %962 = vrot.lane.b32.xlu0 %v946_v13, %s1701_s0  ;;  %v1354_v57 = vmul.f32 -1.442695, %v947_v17  ;;  %v1353_v14 = vmul.f32 -1.442695, %v946_v13 }
 0x9d5   :  { %1507 = vpow2.f32 %v1354_v57 }
 0x9d6   :  { %1509 = vpow2.f32 %v1353_v14  ;;  %v1181_v14 = vld [vmem:[#allocation7 + $0x138] sm:$0xff] }
 0x9d7   :  { %1427 = vmatpush3.msra.mxu0 %v1181_v14 }
 0x9d8   :  { %1428 = vmatprep.subr.mxu0 %v1697_v0 }
 0x9e2   :  { %v1508_v15 = vpop.eup %1507 }
 0x9e3   :  { %v1510_v16 = vpop.eup %1509  ;;  %v955_v20 = vadd.f32 1.0, %v1508_v15  ;;  %v1180_v15 = vld [vmem:[#allocation7 + $0x110] sm:$0xff] }
 0x9e4   :  { %v954_v22 = vadd.f32 1.0, %v1510_v16  ;;  %v1179_v16 = vld [vmem:[#allocation7 + $0xe8] sm:$0xff]  ;;  %1429 = vmatpush3.msra.mxu0 %v1180_v15 }
 0x9e5   :  { %1511 = vrcp.f32 %v955_v20  ;;  %1430 = vmatprep.subr.mxu0 %v1697_v0  ;;  %v1178_v20 = vld [vmem:[#allocation7 + $0xc0] sm:$0xff] }
 0x9e6   :  { %1513 = vrcp.f32 %v954_v22  ;;  %1431 = vmatpush3.msra.mxu0 %v1179_v16  ;;  %v1177_v22 = vld [vmem:[#allocation7 + $0x98] sm:$0xff] }
 0x9e7   :  { %1432 = vmatprep.subr.mxu0 %v1697_v0 }
 0x9e8   :  { %1433 = vmatpush3.msra.mxu0 %v1178_v20 }
 0x9e9   :  { %1434 = vmatprep.subr.mxu0 %v1697_v0 }
 0x9ea   :  { %1435 = vmatpush3.msra.mxu0 %v1177_v22 }
 0x9eb   :  { %1436 = vmatprep.subr.mxu0 %v1697_v0 }
 0x9f2   :  { %v1512_v31 = vpop.eup %1511 }
 0x9f3   :  { %v1514_v28 = vpop.eup %1513  ;;  %v979_v41 = vmul.f32 %v1512_v31, %v975_v37  ;;  %v997_v29 = vrot.slane %v1512_v31, 4 }
 0x9f4   :  { %v978_v45 = vmul.f32 %v1514_v28, %v974_v39  ;;  %v996_v38 = vrot.slane %v1514_v28, 4  ;;  %v1176_v39 = vld [vmem:[#allocation7 + $0x70] sm:$0xff] }
 0x9f5   :  { %1437 = vmatpush3.msra.mxu0 %v1176_v39 }
 0x9f6   :  { %1438 = vmatprep.subr.mxu0 %v1697_v0 }
 0xa45   :  { %v965_v48 = vpop.permute.xlu1 %964  ;;  %v963_v25 = vpop.permute.xlu0 %962 }
 0xa46   :  { %v967_v26 = vrot.slane %v965_v48, 4  ;;  %v966_v27 = vrot.slane %v963_v25, 4 }
 0xa48   :  { %1515 = vtanh.f32 %v967_v26  ;;  %v1269_v26 = vsub.s32 3, %v1798_v24  ;;  %v1174_v24 = vld [vmem:[#allocation7 + $0x20] sm:$0xff] }
 0xa49   :  { %1517 = vtanh.f32 %v966_v27 }
 0xa55   :  { %v1516_v30 = vpop.eup %1515 }
 0xa56   :  { %v1518_v32 = vpop.eup %1517  ;;  %v981_v34 = vmul.f32 %v1516_v30, %v1512_v31 }
 0xa57   :  { %v980_v36 = vmul.f32 %v1518_v32, %v1514_v28 }
 0xa58   :  { %986 = vrot.lane.b32.xlu1 %v981_v34, %s1701_s0 }
 0xa59   :  { %984 = vrot.lane.b32.xlu0 %v980_v36, %s1701_s0 }
 0xaca   :  { %v987_v43 = vpop.permute.xlu1 %986 }
 0xacb   :  { %v2009_v47 = vadd.f32 %v987_v43, %v979_v41  ;;  %v985_v50 = vpop.permute.xlu0 %984  ;;  %v1175_v43 = vld [vmem:[#allocation7 + $0x48] sm:$0xff] }
 0xacc   :  { %v2011_v52 = vadd.f32 %v985_v50, %v978_v45  ;;  %1439 = vmatpush3.msra.mxu0 %v1175_v43 }
 0xacd   :  { %1519 = vtanh.f32 %v2009_v47  ;;  %v1130_v48 = vrot.slane %v2009_v47, 7  ;;  %1440 = vmatprep.subr.mxu0 %v1697_v0 }
 0xace   :  { %1521 = vtanh.f32 %v2011_v52  ;;  %v1129_v25 = vrot.slane %v2011_v52, 7  ;;  %1441 = vmatpush3.msra.mxu0 %v1174_v24 }
 0xada   :  { %v1520_v54 = vpop.eup %1519 }
 0xadb   :  { %v1522_v7 = vpop.eup %1521  ;;  %1004 = vrot.lane.b32.xlu1 %v1520_v54, %s1701_s0 }
 0xadc   :  { %1002 = vrot.lane.b32.xlu0 %v1522_v7, %s1701_s0 }
 0xb4d   :  { %v1005_v35 = vpop.permute.xlu1 %1004 }
 0xb4e   :  { %v1009_v40 = vmul.f32 %v1005_v35, %v997_v29  ;;  %v1003_v46 = vpop.permute.xlu0 %1002 }
 0xb4f   :  { %v1008_v51 = vmul.f32 %v1003_v46, %v996_v38 }
 0xb50   :  { %v1019_v55 = vrot.slane %v1009_v40, %v1014_v33  ;;  %v2022_v56 = vsel %vm1168_vm8, %v1167_v49, %v1009_v40 }
 0xb51   :  { %v1015_v58 = vrot.slane %v1008_v51, %v1014_v33  ;;  %v2024_v59 = vsel %vm1168_vm8, %v1166_v53, %v1008_v51 }
 0xb53   :  { %v1020_v60 = vsel %vm328_vm3, %v1019_v55, %v1015_v58 }
 0xb54   :  { %1355 = vmatmul.mubr.msk.f32.vlgmr.msra.gmra.mxu1 %vm92_vm1, %v1020_v60 }
 0xc14   :  { %v1089_v61 = vpop.f32.mrf.mxu1 }
 0xc16   :  { %v1091_v62 = vpop.f32.mrf.mxu1 }
 0xc17   :  { %v1096_v63 = vcombine.low %v1089_v61, %v1091_v62 }
 0xc19   :  { %v1097_v1 = vrot.slane %v1096_v63, 5  ;;  %v1098_v3 = vrot.slane %v1096_v63, 6 }
 0xc1b   :  { %v1102_v23 = vadd.f32 %v1098_v3, %v1937_v44  ;;  %v1101_v2 = vadd.f32 %v1097_v1, %v1935_v42 }
 0xc1d   :  { %1119 = vrot.lane.b32.xlu1 %v1102_v23, %s1701_s0  ;;  %1117 = vrot.lane.b32.xlu0 %v1101_v2, %s1701_s0  ;;  %v1357_v21 = vmul.f32 -1.442695, %v1102_v23  ;;  %v1356_v4 = vmul.f32 -1.442695, %v1101_v2 }
 0xc1f   :  { %1523 = vpow2.f32 %v1357_v21 }
 0xc20   :  { %1525 = vpow2.f32 %v1356_v4 }
 0xc2c   :  { %v1524_v5 = vpop.eup %1523 }
 0xc2d   :  { %v1526_v6 = vpop.eup %1525  ;;  %v1110_v8 = vadd.f32 1.0, %v1524_v5 }
 0xc2e   :  { %v1109_v9 = vadd.f32 1.0, %v1526_v6 }
 0xc2f   :  { %1527 = vrcp.f32 %v1110_v8 }
 0xc30   :  { %1529 = vrcp.f32 %v1109_v9 }
 0xc3c   :  { %v1528_v42 = vpop.eup %1527 }
 0xc3d   :  { %v1530_v44 = vpop.eup %1529  ;;  %v1134_v27 = vmul.f32 %v1528_v42, %v1130_v48  ;;  %v1152_v50 = vrot.slane %v1528_v42, 4 }
 0xc3e   :  { %v1133_v28 = vmul.f32 %v1530_v44, %v1129_v25  ;;  %v1151_v54 = vrot.slane %v1530_v44, 4 }
 0xc8f   :  { %v1120_v18 = vpop.permute.xlu1 %1119  ;;  %v1118_v19 = vpop.permute.xlu0 %1117 }
 0xc90   :  { %v1122_v10 = vrot.slane %v1120_v18, 4  ;;  %v1121_v11 = vrot.slane %v1118_v19, 4 }
 0xc92   :  { %1531 = vtanh.f32 %v1122_v10 }
 0xc93   :  { %1533 = vtanh.f32 %v1121_v11 }
 0xc9f   :  { %v1532_v12 = vpop.eup %1531 }
 0xca0   :  { %v1534_v17 = vpop.eup %1533  ;;  %v1136_v13 = vmul.f32 %v1532_v12, %v1528_v42 }
 0xca1   :  { %v1135_v57 = vmul.f32 %v1534_v17, %v1530_v44 }
 0xca2   :  { %1141 = vrot.lane.b32.xlu1 %v1136_v13, %s1701_s0 }
 0xca3   :  { %1139 = vrot.lane.b32.xlu0 %v1135_v57, %s1701_s0 }
 0xd14   :  { %v1142_v31 = vpop.permute.xlu1 %1141 }
 0xd15   :  { %v1146_v30 = vadd.f32 %v1142_v31, %v1134_v27  ;;  %v1140_v32 = vpop.permute.xlu0 %1139 }
 0xd16   :  { %v1145_v34 = vadd.f32 %v1140_v32, %v1133_v28 }
 0xd17   :  { %1535 = vtanh.f32 %v1146_v30  ;;  %v1289_v36 = vrot.slane %v1146_v30, %v1269_v26 }
 0xd18   :  { %1537 = vtanh.f32 %v1145_v34  ;;  %v1285_v37 = vrot.slane %v1145_v34, %v1269_v26 }
 0xd1a   :  { %v1290_v41 = vsel %vm1275_vm9, %v1289_v36, %v1285_v37 }
 0xd24   :  { %v1536_v45 = vpop.eup %1535 }
 0xd25   :  { %v1538_v47 = vpop.eup %1537  ;;  %1159 = vrot.lane.b32.xlu1 %v1536_v45, %s1701_s0 }
 0xd26   :  { %1157 = vrot.lane.b32.xlu0 %v1538_v47, %s1701_s0 }
 0xd2a   :  { %1291 = vrot.lane.b32.xlu0 %v1290_v41, %s1701_s0 }
 0xd97   :  { %v1160_v52 = vpop.permute.xlu1 %1159 }
 0xd98   :  { %v1164_v7 = vmul.f32 %v1160_v52, %v1152_v50  ;;  %v1158_v29 = vpop.permute.xlu0 %1157 }
 0xd99   :  { %v1163_v33 = vmul.f32 %v1158_v29, %v1151_v54 }
 0xd9a   :  { %v1173_v35 = vsel %vm1171_vm10, %v2022_v56, %v1164_v7  ;;  %v1274_v0 = vrot.slane %v1164_v7, %v1269_v26 }
 0xd9b   :  { %v1172_v38 = vsel %vm1171_vm10, %v2024_v59, %v1163_v33  ;;  %v1270_v40 = vrot.slane %v1163_v33, %v1269_v26 }
 0xd9c   :  { %v1191_v46 = vcombine.low %v1172_v38, %v1173_v35  ;;  %v1292_v49 = vpop.permute.xlu0 %1291 }
 0xd9d   :  { %1294 = vst.msk [vmem:[#allocation13 - $0x3] sm:$0x18] %vm1278_vm11, %v1292_v49  ;;  %v1276_v51 = vsel %vm1275_vm9, %v1274_v0, %v1270_v40 }
 0xd9e   :  { %1443 = vmatmul.mubr.msk.f32.vlgmr.msra.gmra.mxu0 %vm92_vm1, %v1191_v46  ;;  %1279 = vst.msk [vmem:[#allocation11 - $0x3] sm:$0x18] %vm1278_vm11, %v1276_v51 }
 0xd9f   :  { %1630 = shalt.err (!%p1627_p10)
}
 0xda0   :  { %1314 = dma.vmem_to_hbm [thread:$0]  %s1312_s20, 32, %s2072_s8, [#allocation12]  }
 0xda1   :  { %s1703_s23 = smov [#allocation13]  }
 0xda2   :  { %s1321_s24 = sshll.u32 %s1703_s23, 4  ;;  %s1322_s24 = int_to_ptr.vmem [resolvable:$true] %s1321_s24 }
 0xda3   :  { %s1639_s25 = scalar_lea.vmem %s1322_s24, 32  ;;  %p1644_p12 = scmp.lt.s32.totalorder %s1322_s24, %s1322_s24 }
 0xda4   :  { %p1640_p11 = scmp.ne.s32.totalorder %s1322_s24, %s1639_s25  ;;  %p1645_p13 = scmp.lt.s32.totalorder %s1639_s25, %s1639_s25 }
 0xda6   :  { %p1646_p0 = por %p1645_p13, %p1644_p12 }
 0xda8   :  { %p1647_p1 = pnand %p1646_p0, %p1640_p11 }
 0xdaa   :  { %1650 = shalt.err (!%p1647_p1)
}
 0xdab   :  { %1324 = dma.vmem_to_hbm [thread:$0]  %s1322_s24, 32, %s2073_s9, [#allocation12]   ;;  %v1358_v53 = vld [vmem:[%s2070_s6 + $0x4] ss:$0 sm:$0xff] }
 0xdac   :  { %s1704_s29 = smov [#allocation10]  }
 0xdad   :  { %s1301_s8 = sshll.u32 %s1704_s29, 4  ;;  %s1302_s8 = int_to_ptr.vmem [resolvable:$true] %s1301_s8 }
 0xdae   :  { %s1659_s30 = scalar_lea.vmem %s1302_s8, 128  ;;  %p1664_p3 = scmp.lt.s32.totalorder %s1302_s8, %s1302_s8 }
 0xdaf   :  { %p1660_p2 = scmp.ne.s32.totalorder %s1302_s8, %s1659_s30  ;;  %p1665_p4 = scmp.lt.s32.totalorder %s1659_s30, %s1659_s30 }
 0xdb1   :  { %p1666_p5 = por %p1665_p4, %p1664_p3 }
 0xdb3   :  { %p1667_p6 = pnand %p1666_p5, %p1660_p2 }
 0xe5e   :  { %v1260_v55 = vpop.f32.mrf.mxu0 }
 0xe5f   :  { %v1261_v56 = vadd.f32 %v1358_v53, %v1260_v55 }
 0xe60   :  { %v1444_v58 = vpop.f32.mrf.mxu0 }
 0xe61   :  { %1264 = vst [vmem:[#allocation10] sm:$0xff] %v1261_v56 }
 0xe62   :  { %1670 = shalt.err (!%p1667_p6)
}
 0xe63   :  { %1304 = dma.vmem_to_hbm [thread:$0]  %s1302_s8, 128, %s2071_s7, [#allocation4]  }
 0xe64   :  { %1685 = dma.done.wait [#allocation4], 128  }
 0xe65   :  { %1686 = vsyncadd [#allocation4], 4294967168 }
 0xe66   :  { %1687 = dma.done.wait [#allocation12], 64  }
 0xe67   :  { %1688 = vsyncadd [#allocation12], 4294967232 }
 0xe68   :  { %1334 = vsyncpa [#allocation3], 1 }
 0xe69   :  { %1335 = vsyncpa [#allocation6], 1 }
 0xe6a   :  { %1336 = vsyncpa [#allocation9], 1 }
 0xe6b   :  { %1337 = vsyncpa [#allocation4], 1 }
 0xe6c   :  { %1338 = vsyncpa [#allocation12], 1 }

</bundles_post_ra>
